<compile_context>
chip_gen: v7x
topology: tpu7x:2x2x1
jax: 0.10.0
libtpu: 0.0.40
codegen_flags: <defaults>
</compile_context>

<pallas_src>
import numpy as np
import jax
import jax.numpy as jnp
from jax.experimental import pallas as pl
from jax.experimental.pallas import tpu as pltpu


_BINOMIAL = {
    1: [1.0],
    2: [1.0, 1.0],
    3: [1.0, 2.0, 1.0],
    4: [1.0, 3.0, 3.0, 1.0],
    5: [1.0, 4.0, 6.0, 4.0, 1.0],
    6: [1.0, 5.0, 10.0, 10.0, 5.0, 1.0],
    7: [1.0, 6.0, 15.0, 20.0, 15.0, 6.0, 1.0],
}


def _conv_matrix(size, filt_size, stride, pad_l, pad_r, pad_type):
    """(size, size_out) matrix folding 1-D binomial blur + stride + edge padding."""
    a = np.asarray(_BINOMIAL[filt_size], dtype=np.float64)
    w1d = a / a.sum()                        # outer(w1d, w1d) == normalized 2-D filter
    size_out = (size + pad_l + pad_r - filt_size) // stride + 1
    if size_out < 1:
        raise ValueError("input spatial dim too small for this filter/stride")
    m = np.zeros((size, size_out), dtype=np.float64)
    for o in range(size_out):
        for t in range(filt_size):
            j = o * stride + t - pad_l       # source coordinate (may fall in the pad)
            if 0 <= j < size:
                s = j
            elif pad_type in ("refl", "reflect"):
                s = -j if j < 0 else 2 * (size - 1) - j
            elif pad_type in ("repl", "replicate"):
                s = min(max(j, 0), size - 1)
            elif pad_type == "zero":
                continue
            else:
                raise ValueError(f"pad type [{pad_type}] not recognized")
            if not 0 <= s < size:
                raise ValueError("padding exceeds input size (reflect needs pad < size)")
            m[s, o] += w1d[t]
    return m.astype(np.float32), size_out


def _blurpool_kernel(x_ref, hmat_ref, wmat_ref, o_ref):
    """out[c] = (Hmat @ x[c]) @ Wmat for the cb channel images of this block."""
    hmat = hmat_ref[...]                     # (Ho, H)  f32, vertical blur+stride+pad
    wmat = wmat_ref[...]                     # (W, Wo)  f32, horizontal blur+stride+pad
    x = x_ref[...]                           # (cb, H, W) in the input dtype
    cb = x.shape[0]
    outs = []
    for c in range(cb):                      # unrolled: cb independent MXU matmul pairs
        xc = x[c].astype(jnp.float32)
        t = jnp.dot(hmat, xc, preferred_element_type=jnp.float32,
                    precision=jax.lax.Precision.HIGHEST)              # (Ho, W)
        outs.append(jnp.dot(t, wmat, preferred_element_type=jnp.float32,
                            precision=jax.lax.Precision.HIGHEST))     # (Ho, Wo)
    o_ref[...] = jnp.stack(outs, axis=0).astype(o_ref.dtype)


def _padded_tile_bytes(rows, cols, itemsize):
    """VMEM footprint of a (rows, cols) tile incl. sublane(8)/lane(128) padding."""
    return (-(-rows // 8) * 8) * (-(-cols // 128) * 128) * itemsize


def _vmem_footprint_bytes(cb, h, w, ho, wo, itemsize):
    in_tile = cb * _padded_tile_bytes(h, w, itemsize)
    out_tile = cb * _padded_tile_bytes(ho, wo, itemsize)
    mats = _padded_tile_bytes(ho, h, 4) + _padded_tile_bytes(w, wo, 4)
    # f32 temporaries: stacked result before the cast + live per-channel intermediates.
    scratch = cb * _padded_tile_bytes(ho, wo, 4) + 2 * _padded_tile_bytes(ho, w, 4)
    # Double-buffer every pipelined operand (inputs, constants, output).
    return 2 * (in_tile + out_tile + mats) + scratch


def _vmem_budget_and_limit():
    cap = 64 * 1024 * 1024                   # conservative fallback = v7x per-TC VMEM
    try:
        info = pltpu.get_tpu_info()
        cap = int(getattr(info, "vmem_capacity_bytes", cap) or cap)
    except Exception:
        pass
    # ~48 MiB scoped limit on v7x (64 MiB VMEM), ~96 MiB on v5e/v6e (128 MiB VMEM).
    limit = int(min(cap * 3 // 4, 100 * 1024 * 1024))
    budget = int(limit * 0.8)                # headroom for Mosaic internal scratch
    return budget, limit


def _choose_channels_per_block(n, c, h, w, ho, wo, itemsize, budget, cap=32):
    divisors = [d for d in range(1, c + 1) if c % d == 0 and d <= cap]
    fitting = [d for d in divisors
               if _vmem_footprint_bytes(d, h, w, ho, wo, itemsize) <= budget]
    if not fitting:
        fitting = [1]   # TODO(synk): H-band tiling when one channel image overflows VMEM
    # Prefer block sizes that leave >= 2 grid steps so both v7x TensorCores get work.
    prefer = [d for d in fitting if n * (c // d) >= 2] or fitting
    return max(prefer)


def blurpool(x, *, filt_size: int = 4, stride: int = 2, pad_off: int = 0,
             pad_type: str = "reflect"):
    """BlurPool forward.  x: (N, C, H, W) -> (N, C, Ho, Wo), dtype preserved."""
    assert 1 <= filt_size <= 7, "filt_size must be in [1, 7]"
    N, C, H, W = x.shape
    pad_l = (filt_size - 1) // 2 + pad_off
    pad_r = int(np.ceil((filt_size - 1) / 2.0)) + pad_off

    # Same fast path as the PyTorch module: pure strided subsampling.
    if filt_size == 1 and pad_off == 0:
        return x[:, :, ::stride, ::stride]

    mh, Ho = _conv_matrix(H, filt_size, stride, pad_l, pad_r, pad_type)
    mw, Wo = _conv_matrix(W, filt_size, stride, pad_l, pad_r, pad_type)
    hmat = jnp.asarray(mh.T)                 # (Ho, H)
    wmat = jnp.asarray(mw)                   # (W, Wo)

    itemsize = np.dtype(x.dtype).itemsize
    budget, vmem_limit = _vmem_budget_and_limit()
    cb = _choose_channels_per_block(N, C, H, W, Ho, Wo, itemsize, budget)

    out = pl.pallas_call(
        _blurpool_kernel,
        out_shape=jax.ShapeDtypeStruct((N, C, Ho, Wo), x.dtype),
        grid=(N, C // cb),
        in_specs=[
            # cb unpadded channel images straight from NCHW HBM (read exactly once).
            pl.BlockSpec((None, cb, H, W), lambda n, c: (n, c, 0, 0)),
            # Tiny constant blur/downsample matrices, resident across the grid.
            pl.BlockSpec((Ho, H), lambda n, c: (0, 0)),
            pl.BlockSpec((W, Wo), lambda n, c: (0, 0)),
        ],
        out_specs=pl.BlockSpec((None, cb, Ho, Wo), lambda n, c: (n, c, 0, 0)),
        compiler_params=pltpu.CompilerParams(
            dimension_semantics=("parallel", "parallel"),
            vmem_limit_bytes=int(vmem_limit)),
    )(x, hmat, wmat)
    return out


def _reference_blurpool_np(x_np, filt_size, stride, pad_off=0, pad_type="reflect"):
    """Exact float64 numpy reference (mirrors F.conv2d(pad(inp), filt, stride, groups=C))."""
    a = np.asarray(_BINOMIAL[filt_size], dtype=np.float64)
    filt = np.outer(a, a)
    filt /= filt.sum()
    pad_l = (filt_size - 1) // 2 + pad_off
    pad_r = int(np.ceil((filt_size - 1) / 2.0)) + pad_off
    mode = {"reflect": "reflect", "refl": "reflect",
            "replicate": "edge", "repl": "edge", "zero": "constant"}[pad_type]
    xp = np.pad(x_np.astype(np.float64),
                ((0, 0), (0, 0), (pad_l, pad_r), (pad_l, pad_r)), mode=mode)
    _, _, Hp, Wp = xp.shape
    Ho = (Hp - filt_size) // stride + 1
    Wo = (Wp - filt_size) // stride + 1
    out = np.zeros(x_np.shape[:2] + (Ho, Wo), dtype=np.float64)
    for dy in range(filt_size):
        for dx in range(filt_size):
            out += filt[dy, dx] * xp[:, :, dy:dy + stride * Ho:stride,
                                     dx:dx + stride * Wo:stride]
    return out


if __name__ == "__main__":
    key = jax.random.PRNGKey(0)
    k0, k1 = jax.random.split(key)

    # Tolerance note: with Precision.HIGHEST the error vs float64 is ~1e-6; the
    # looser bound below also covers MXU f32-via-bf16-pass rounding just in case.
    RTOL = ATOL = 2e-3

    # Module defaults: filt_size=4, stride=2, reflect pad.
    N, C, H, W = 2, 4, 16, 16
    x = jax.random.normal(k0, (N, C, H, W), dtype=jnp.float32)
    out = jax.block_until_ready(blurpool(x, filt_size=4, stride=2))
    assert out.shape == (N, C, 8, 8), out.shape
    np.testing.assert_allclose(np.asarray(out),
                               _reference_blurpool_np(np.asarray(x), 4, 2),
                               rtol=RTOL, atol=ATOL)

    # Odd filter size (asymmetric reflect pad split).
    out3 = jax.block_until_ready(blurpool(x, filt_size=3, stride=2))
    np.testing.assert_allclose(np.asarray(out3),
                               _reference_blurpool_np(np.asarray(x), 3, 2),
                               rtol=RTOL, atol=ATOL)

    # Larger input / more channels (exercises channel-block selection + 2-D grid).
    x2 = jax.random.normal(k1, (2, 8, 32, 32), dtype=jnp.float32)
    out2 = jax.block_until_ready(blurpool(x2, filt_size=4, stride=2))
    assert out2.shape == (2, 8, 16, 16), out2.shape
    np.testing.assert_allclose(np.asarray(out2),
                               _reference_blurpool_np(np.asarray(x2), 4, 2),
                               rtol=RTOL, atol=ATOL)

    # filt_size == 1 fast path (pure strided subsampling, as in the PyTorch module).
    out1 = jax.block_until_ready(blurpool(x, filt_size=1, stride=2))
    np.testing.assert_allclose(np.asarray(out1), np.asarray(x)[:, :, ::2, ::2],
                               rtol=0, atol=0)

    print("KERNEL_OK")
</pallas_src>

<mosaic_0001>
module attributes {stable_mosaic.version = 11 : i64} {
  func.func @_blurpool_kernel(%arg0: i32, %arg1: i32, %arg2: memref<1x4x16x16xf32, #tpu.memory_space<vmem>>, %arg3: memref<8x16xf32, #tpu.memory_space<vmem>>, %arg4: memref<16x8xf32, #tpu.memory_space<vmem>>, %arg5: memref<1x4x8x8xf32, #tpu.memory_space<vmem>>) attributes {dimension_semantics = [#tpu.dimension_semantics<parallel>, #tpu.dimension_semantics<parallel>], iteration_bounds = array<i64: 2, 1>, scalar_prefetch = 0 : i64, scratch_operands = 0 : i64, tpu.core_type = #tpu.core_type<tc>, window_params = [{transform_indices = @transform_0, window_bounds = array<i64: 1, 4, 16, 16>}, {pipeline_mode = #tpu.pipeline_mode<synchronous>, transform_indices = @transform_1, window_bounds = array<i64: 8, 16>}, {pipeline_mode = #tpu.pipeline_mode<synchronous>, transform_indices = @transform_2, window_bounds = array<i64: 16, 8>}, {transform_indices = @transform_3, window_bounds = array<i64: 1, 4, 8, 8>}]} {
    %c0 = arith.constant 0 : index
    %c0_0 = arith.constant 0 : index
    %0 = vector.load %arg3[%c0, %c0_0] : memref<8x16xf32, #tpu.memory_space<vmem>>, vector<8x16xf32>
    %c0_1 = arith.constant 0 : index
    %c0_2 = arith.constant 0 : index
    %1 = vector.load %arg4[%c0_1, %c0_2] : memref<16x8xf32, #tpu.memory_space<vmem>>, vector<16x8xf32>
    %c0_3 = arith.constant 0 : index
    %c0_4 = arith.constant 0 : index
    %c0_5 = arith.constant 0 : index
    %c0_6 = arith.constant 0 : index
    %2 = vector.load %arg2[%c0_3, %c0_4, %c0_5, %c0_6] : memref<1x4x16x16xf32, #tpu.memory_space<vmem>>, vector<1x4x16x16xf32>
    %3 = vector.shape_cast %2 : vector<1x4x16x16xf32> to vector<4x16x16xf32>
    %4 = vector.extract_strided_slice %3 {offsets = [0, 0, 0], sizes = [1, 16, 16], strides = [1, 1, 1]} : vector<4x16x16xf32> to vector<1x16x16xf32>
    %5 = vector.shape_cast %4 : vector<1x16x16xf32> to vector<16x16xf32>
    %cst = arith.constant dense<0.000000e+00> : vector<8x16xf32>
    %6 = tpu.matmul %0, %5, %cst {dimension_numbers = #tpu.dot_dimension_numbers<[1], [0], [0], [1], [0, 0, 1, 1], [], []>, precision = #tpu.contract_precision<fp32>} : vector<8x16xf32>, vector<16x16xf32>, vector<8x16xf32> -> vector<8x16xf32>
    %cst_7 = arith.constant dense<0.000000e+00> : vector<8x8xf32>
    %7 = tpu.matmul %6, %1, %cst_7 {dimension_numbers = #tpu.dot_dimension_numbers<[1], [0], [0], [1], [0, 0, 1, 1], [], []>, precision = #tpu.contract_precision<fp32>} : vector<8x16xf32>, vector<16x8xf32>, vector<8x8xf32> -> vector<8x8xf32>
    %8 = vector.extract_strided_slice %3 {offsets = [1, 0, 0], sizes = [1, 16, 16], strides = [1, 1, 1]} : vector<4x16x16xf32> to vector<1x16x16xf32>
    %9 = vector.shape_cast %8 : vector<1x16x16xf32> to vector<16x16xf32>
    %cst_8 = arith.constant dense<0.000000e+00> : vector<8x16xf32>
    %10 = tpu.matmul %0, %9, %cst_8 {dimension_numbers = #tpu.dot_dimension_numbers<[1], [0], [0], [1], [0, 0, 1, 1], [], []>, precision = #tpu.contract_precision<fp32>} : vector<8x16xf32>, vector<16x16xf32>, vector<8x16xf32> -> vector<8x16xf32>
    %cst_9 = arith.constant dense<0.000000e+00> : vector<8x8xf32>
    %11 = tpu.matmul %10, %1, %cst_9 {dimension_numbers = #tpu.dot_dimension_numbers<[1], [0], [0], [1], [0, 0, 1, 1], [], []>, precision = #tpu.contract_precision<fp32>} : vector<8x16xf32>, vector<16x8xf32>, vector<8x8xf32> -> vector<8x8xf32>
    %12 = vector.extract_strided_slice %3 {offsets = [2, 0, 0], sizes = [1, 16, 16], strides = [1, 1, 1]} : vector<4x16x16xf32> to vector<1x16x16xf32>
    %13 = vector.shape_cast %12 : vector<1x16x16xf32> to vector<16x16xf32>
    %cst_10 = arith.constant dense<0.000000e+00> : vector<8x16xf32>
    %14 = tpu.matmul %0, %13, %cst_10 {dimension_numbers = #tpu.dot_dimension_numbers<[1], [0], [0], [1], [0, 0, 1, 1], [], []>, precision = #tpu.contract_precision<fp32>} : vector<8x16xf32>, vector<16x16xf32>, vector<8x16xf32> -> vector<8x16xf32>
    %cst_11 = arith.constant dense<0.000000e+00> : vector<8x8xf32>
    %15 = tpu.matmul %14, %1, %cst_11 {dimension_numbers = #tpu.dot_dimension_numbers<[1], [0], [0], [1], [0, 0, 1, 1], [], []>, precision = #tpu.contract_precision<fp32>} : vector<8x16xf32>, vector<16x8xf32>, vector<8x8xf32> -> vector<8x8xf32>
    %16 = vector.extract_strided_slice %3 {offsets = [3, 0, 0], sizes = [1, 16, 16], strides = [1, 1, 1]} : vector<4x16x16xf32> to vector<1x16x16xf32>
    %17 = vector.shape_cast %16 : vector<1x16x16xf32> to vector<16x16xf32>
    %cst_12 = arith.constant dense<0.000000e+00> : vector<8x16xf32>
    %18 = tpu.matmul %0, %17, %cst_12 {dimension_numbers = #tpu.dot_dimension_numbers<[1], [0], [0], [1], [0, 0, 1, 1], [], []>, precision = #tpu.contract_precision<fp32>} : vector<8x16xf32>, vector<16x16xf32>, vector<8x16xf32> -> vector<8x16xf32>
    %cst_13 = arith.constant dense<0.000000e+00> : vector<8x8xf32>
    %19 = tpu.matmul %18, %1, %cst_13 {dimension_numbers = #tpu.dot_dimension_numbers<[1], [0], [0], [1], [0, 0, 1, 1], [], []>, precision = #tpu.contract_precision<fp32>} : vector<8x16xf32>, vector<16x8xf32>, vector<8x8xf32> -> vector<8x8xf32>
    %20 = vector.shape_cast %7 : vector<8x8xf32> to vector<1x8x8xf32>
    %21 = vector.shape_cast %11 : vector<8x8xf32> to vector<1x8x8xf32>
    %22 = vector.shape_cast %15 : vector<8x8xf32> to vector<1x8x8xf32>
    %23 = vector.shape_cast %19 : vector<8x8xf32> to vector<1x8x8xf32>
    %24 = tpu.concatenate %20, %21, %22, %23 in 0 : vector<1x8x8xf32>, vector<1x8x8xf32>, vector<1x8x8xf32>, vector<1x8x8xf32> -> vector<4x8x8xf32>
    %c0_14 = arith.constant 0 : index
    %c0_15 = arith.constant 0 : index
    %c0_16 = arith.constant 0 : index
    %c0_17 = arith.constant 0 : index
    %25 = vector.load %arg5[%c0_14, %c0_15, %c0_16, %c0_17] : memref<1x4x8x8xf32, #tpu.memory_space<vmem>>, vector<1x4x8x8xf32>
    %26 = vector.shape_cast %25 : vector<1x4x8x8xf32> to vector<4x8x8xf32>
    %27 = vector.shape_cast %24 : vector<4x8x8xf32> to vector<1x4x8x8xf32>
    tpu.vector_store %arg5[%c0_14, %c0_15, %c0_16, %c0_17], %27 {strides = array<i32>} : memref<1x4x8x8xf32, #tpu.memory_space<vmem>>, vector<1x4x8x8xf32>,
    return
  }
  func.func @transform_0(%arg0: i32, %arg1: i32) -> (i32, i32, i32, i32) {
    %c0_i32 = arith.constant 0 : i32
    %c0_i32_0 = arith.constant 0 : i32
    %c0_i32_1 = arith.constant 0 : i32
    return %arg0, %arg1, %c0_i32, %c0_i32_0 : i32, i32, i32, i32
  }
  func.func @transform_1(%arg0: i32, %arg1: i32) -> (i32, i32) {
    %c0_i32 = arith.constant 0 : i32
    %c0_i32_0 = arith.constant 0 : i32
    %c0_i32_1 = arith.constant 0 : i32
    return %c0_i32, %c0_i32_0 : i32, i32
  }
  func.func @transform_2(%arg0: i32, %arg1: i32) -> (i32, i32) {
    %c0_i32 = arith.constant 0 : i32
    %c0_i32_0 = arith.constant 0 : i32
    %c0_i32_1 = arith.constant 0 : i32
    return %c0_i32, %c0_i32_0 : i32, i32
  }
  func.func @transform_3(%arg0: i32, %arg1: i32) -> (i32, i32, i32, i32) {
    %c0_i32 = arith.constant 0 : i32
    %c0_i32_0 = arith.constant 0 : i32
    %c0_i32_1 = arith.constant 0 : i32
    return %arg0, %arg1, %c0_i32, %c0_i32_0 : i32, i32, i32, i32
  }
}

</mosaic_0001>

<bundles_post_ra>
// kernel: tpu_custom_call.1
= control target key start
LH: loop header
LB: loop body
LE: loop exit
PB: predicated region body
PF: predicated region fallthrough
CT: control target
= control target key end

     0   :  { %8 = vsyncpa [#allocation3], 0  ;;  %s5366_s0 = inlined_call_operand.hbm [shape: f32[2,4,16,16], index: 0, kind: input, shape index: {}]   ;;  %s5367_s1 = inlined_call_operand.vmem [shape: f32[8,16], index: 1, kind: input, shape index: {}]   ;;  %s5368_s2 = inlined_call_operand.vmem [shape: f32[16,8], index: 2, kind: input, shape index: {}]   ;;  %s5369_s3 = inlined_call_operand.hbm [shape: f32[2,4,8,8], index: 3, kind: output, shape index: {}]  }
   0x1   :  { %10 = vsyncpa [#allocation3 + $0x1], 0 }
   0x2   :  { %11 = vsyncpa [#allocation4], 0 }
   0x3   :  { %13 = vsyncpa [#allocation4 + $0x1], 0  ;;  %s4950_s12 = smov 0   ;;  %s4952_s13 = smov 0  }
   0x4   :  { %s4954_s14 = smov 0   ;;  %s4956_s15 = smov 0  }
   0x5   :  { %s4958_s16 = smov 0   ;;  %s4960_s17 = smov 0  }
   0x6 LB: > { %s4017_s18 = sadd.s32 4294967295, %s4919_s17   ;;  %s4018_s19 = sadd.s32 4294967294, %s4919_s17   ;;  %s4919_s17 = sphi %s4960_s17, %s19_s17   ;;  %s4915_s16 = sphi %s4958_s16, %s5384_s16   ;;  %s4911_s15 = sphi %s4956_s15, %s5383_s15   ;;  %s4907_s14 = sphi %s4954_s14, %s5382_s14   ;;  %s4903_s13 = sphi %s4952_s13, %s5381_s13   ;;  %s4899_s12 = sphi %s4950_s12, %s5380_s12  }
   0x7   : > { %s31_s20 = sadd.s32 1, %s4915_s16  ;;  %s40_s21 = sadd.s32 1, %s4907_s14 }
   0x8   : > { %p33_p0 = scmp.ge.s32.totalorder %s31_s20, 2  ;;  %p47_p1 = scmp.ne.s32.totalorder %s4907_s14, %s4903_s13 }
   0x9   : > { %p48_p2 = scmp.eq.s32.totalorder %s4919_s17, 0  ;;  %p53_p3 = scmp.ne.s32.totalorder %s4903_s13, %s4899_s12 }
   0xa   : > { %s5386_s20 = smov (%p33_p0, %s31_s20), 0  ;;  %p54_p5 = scmp.eq.s32.totalorder %s4017_s18, 0 }
   0xb   : > { %p4991_p4 = por %p48_p2, %p47_p1  ;;  %s35_s23 = ssub.s32 %s4915_s16, %s5386_s20 }
   0xc   : > { %p121_p6 = scmp.eq.s32.totalorder %s4017_s18, 1  ;;  %p38_p7 = scmp.eq.s32.totalorder %s35_s23, 0 }
   0xd   : > { %p4997_p8 = por %p54_p5, %p53_p3  ;;  %p127_p10 = scmp.eq.s32.totalorder %s4018_s19, 1 }
   0xe   : > { %p5001_p9 = por %p121_p6, %p47_p1  ;;  %p4750_p13 = scmp.lt.s32.totalorder %s4919_s17, 2 }
   0xf   : > { %s5006_s26 = scalar_select %p38_p7, %s4907_s14, %s40_s21  }
  0x10   : > { %s5373_s25 = scalar_select %p5001_p9, 1, 0 }
  0x11   : > { %p5008_p11 = por %p127_p10, %p53_p3  ;;  %s153_s28 = sand.u32 1, %s4907_s14  }
  0x12   : > { %s4021_s29 = sshll.u32 %s153_s28, 6  ;;  %s4032_s30 = sshll.u32 %s4915_s16, 10 }
  0x13   : > { %s5374_s27 = scalar_select %p5008_p11, 1, 0 }
  0x14   : > { %s5019_s6 = scalar_lea.hbm %s5366_s0, %s4032_s30  ;;  %s157_s7 = scalar_lea.vmem [#allocation2], %s4021_s29 }
  0x15   : > { %s167_s8 = sshll.u32 %s157_s7, 4  ;;  %p5025_p0 = pnand %p4750_p13, %p4991_p4  ;;  %s5021_s8 = int_to_ptr.vmem [resolvable:$true] %s167_s8 }
  0x16   : > { %s5030_s10 = scalar_lea.sflag [#allocation3], %s153_s28  ;;  %s4807_s11 = scalar_lea.hbm %s5019_s6, 1024 }
  0x17   : > { %p4808_p2 = scmp.ne.s32.totalorder %s5019_s6, %s4807_s11  ;;  %p4809_p3 = pneg %p5025_p0 }
  0x18   : > { %s4812_s21 = scalar_lea.hbm %s5366_s0, 2048  ;;  %p4813_p4 = scmp.lt.u32.totalorder %s5019_s6, %s5366_s0 }
  0x19   : > { %p4810_p5 = pnand %p4809_p3, %p4808_p2  ;;  %p4814_p7 = scmp.lt.u32.totalorder %s4812_s21, %s4807_s11 }
  0x1a   : > { %p4816_p13 = scmp.lt.u32.totalorder %s4807_s11, %s5019_s6 }
  0x1b   : > { %p4811_p6 = pneg %p4810_p5  ;;  %p4815_p10 = por %p4814_p7, %p4813_p4 }
  0x1d   : > { %p4817_p12 = por %p4816_p13, %p4815_p10 }
  0x1f   : > { %p4818_p1 = pnand %p4817_p12, %p4811_p6 }
  0x21   : > { %4821 = shalt.err (!%p4818_p1)
}
  0x22   : > { %s4822_s28 = scalar_lea.vmem %s5021_s8, 1024  ;;  %s4921_s29 = smov [#allocation2]  }
  0x23   : > { %p4823_p2 = scmp.ne.s32.totalorder %s5021_s8, %s4822_s28  ;;  %s4827_s30 = sshll.u32 %s4921_s29, 4  ;;  %s4828_s30 = int_to_ptr.vmem [resolvable:$false] %s4827_s30 }
  0x24   : > { %s4829_s4 = scalar_lea.vmem %s4828_s30, 2048  ;;  %p4830_p9 = scmp.lt.s32.totalorder %s5021_s8, %s4828_s30 }
  0x25   : > { %p4825_p5 = pnand %p4823_p2, %p4809_p3  ;;  %p4831_p4 = scmp.lt.s32.totalorder %s4829_s4, %s4822_s28 }
  0x27   : > { %p4826_p11 = pneg %p4825_p5  ;;  %p4832_p7 = por %p4831_p4, %p4830_p9 }
  0x29   : > { %p4833_p10 = pnand %p4832_p7, %p4826_p11 }
  0x2b   : > { %4836 = shalt.err (!%p4833_p10)
}
  0x2c   : > { %s4922_s5 = smov 128   ;;  %s4923_s7 = smov 8  }
  0x2d   : > { %4745 = dma.hbm_to_vmem [thread:$0]  (!%p5025_p0), %s5019_s6, 1024, %s5021_s8, %s5030_s10, %s4922_s5, %s4922_s5, %s4923_s7  }
  0x2e   : > { %p175_p12 = scmp.lt.s32.totalorder %s4919_s17, 3  ;;  %p5376_p1 = scmp.ge.s32.totalorder %s4919_s17, 1 }
  0x30   : > { %p176_p3 = pnand %p5376_p1, %p175_p12 }
  0x31   : > { %s5062_s11 = sand.u32 (!%p176_p3), 1, %s4903_s13  }
  0x32   : > { %179 = sbr.rel (%p176_p3) target bundleno = 733 (0x2dd), region = 32  ;;  %s4025_s18 = sshll.u32 (!%p176_p3), %s5062_s11, 6 }
  0x33   : > { %s182_s19 = scalar_lea.sflag (!%p176_p3), [#allocation3], %s5062_s11  ;;  %s5066_s21 = scalar_lea.vmem (!%p176_p3), [#allocation2], %s4025_s18 }
  0x39   : > { %4890 = dma.done.wait (%p4997_p8), %s182_s19, 1024  }
  0x3a   : > { %4892 = vsyncadd (%p4997_p8), %s182_s19, 4294966272  ;;  %v4924_v0 = vmov 0.0|0.0   ;;  %vm4925_vm0 = vmmov 0   ;;  %v4926_v1 = vmov 0.0   ;;  %vm221_vm1 = vcmask 130048   ;;  %v213_v2 = vld [vmem:[%s5066_s21] sm:$0xff] }
  0x3b   : > { %4514 = vmatprep.subr.bf16.mxu0 %v4924_v0  ;;  %4182 = vmatprep.mubr.msk.f32.mxu0 %vm4925_vm0, %v4926_v1  ;;  %v214_v3 = vld [vmem:[%s5066_s21 + $0x8] sm:$0xff]  ;;  %v210_v4 = vld [vmem:[%s5367_s1] sm:$0xff]  ;;  %v226_v5 = vand.u32 4294901760, %v213_v2  ;;  %v215_v24 = vld [vmem:[%s5066_s21 + $0x10] sm:$0xff]  ;;  %s4026_s23 = sshll.u32 %s5062_s11, 5  ;;  %vm3909_vm2 = vcmask 64512  }
  0x3c   : > { %4532 = vmatprep.subr.bf16.mxu1 %v4924_v0  ;;  %4224 = vmatprep.mubr.msk.f32.mxu1 %vm4925_vm0, %v4926_v1  ;;  %v229_v6 = vand.u32 4294901760, %v214_v3  ;;  %v223_v7 = vsel %vm221_vm1, %v210_v4, 0  ;;  %v216_v25 = vld [vmem:[%s5066_s21 + $0x18] sm:$0xff]  ;;  %v1147_v27 = vand.u32 4294901760, %v215_v24  ;;  %v217_v40 = vld [vmem:[%s5066_s21 + $0x20] sm:$0xff]  ;;  %v218_v41 = vld [vmem:[%s5066_s21 + $0x28] sm:$0xff] }
  0x3d   : > { %v5084_v8 = vand.u32 4294901760, %v223_v7  ;;  %v304_v10 = vsub.f32 %v213_v2, %v226_v5  ;;  %v1150_v28 = vand.u32 4294901760, %v216_v25  ;;  %v2068_v43 = vand.u32 4294901760, %v217_v40  ;;  %v219_v56 = vld [vmem:[%s5066_s21 + $0x30] sm:$0xff]  ;;  %v220_v57 = vld [vmem:[%s5066_s21 + $0x38] sm:$0xff]  ;;  %s207_s28 = scalar_lea.vmem [#allocation5], %s4026_s23 }
  0x3e   : > { %v4515_v9 = vpack.c.bf16 %v229_v6, %v226_v5  ;;  %v311_v11 = vsub.f32 %v214_v3, %v229_v6  ;;  %v1225_v29 = vsub.f32 %v215_v24, %v1147_v27  ;;  %v2071_v44 = vand.u32 4294901760, %v218_v41  ;;  %s3930_s29 = sshll.u32 %s207_s28, 4  ;;  %s4033_s30 = sshll.u32 %s4911_s15, 9  ;;  %s5311_s29 = int_to_ptr.vmem [resolvable:$true] %s3930_s29 }
  0x3f   : > { %v5087_v12 = vsub.f32 %v223_v7, %v5084_v8  ;;  %v305_v13 = vand.u32 4294901760, %v304_v10  ;;  %v1232_v30 = vsub.f32 %v216_v25, %v1150_v28  ;;  %v4551_v35 = vpack.c.bf16 %v1150_v28, %v1147_v27  ;;  %s5316_s7 = scalar_lea.hbm %s5369_s3, %s4033_s30  ;;  %s3915_s18 = scalar_lea.sflag [#allocation4], %s5062_s11 }
  0x40   : > { %4516 = vmatpush3.bf16.msra.mxu0 %v4515_v9  ;;  %v312_v14 = vand.u32 4294901760, %v311_v11  ;;  %v4521_v23 = vpack.c.bf16 %v311_v11, %v304_v10  ;;  %v1226_v31 = vand.u32 4294901760, %v1225_v29  ;;  %v2146_v45 = vsub.f32 %v217_v40, %v2068_v43  ;;  %s4837_s19 = scalar_lea.vmem %s5311_s29, 512  ;;  %p5377_p9 = scmp.ne.s32.totalorder %s5373_s25, 0 }
  0x41   : > { %v5090_v15 = vand.u32 4294901760, %v5087_v12  ;;  %4517 = vmatprep.subr.bf16.mxu0 %v4924_v0  ;;  %v306_v16 = vsub.f32 %v304_v10, %v305_v13  ;;  %v1233_v32 = vand.u32 4294901760, %v1232_v30  ;;  %v4557_v39 = vpack.c.bf16 %v1232_v30, %v1225_v29  ;;  %v212_v10 = vld [vmem:[%s5368_s2 + $0x8] sm:$0xff]  ;;  %p4838_p8 = scmp.ne.s32.totalorder %s5311_s29, %s4837_s19  ;;  %s4927_s15 = smov [#allocation5]  }
  0x42   : > { %v313_v17 = vsub.f32 %v311_v11, %v312_v14  ;;  %v4527_v26 = vpack.c.bf16 %v312_v14, %v305_v13  ;;  %v1227_v33 = vsub.f32 %v1225_v29, %v1226_v31  ;;  %v2153_v46 = vsub.f32 %v218_v41, %v2071_v44  ;;  %s4841_s21 = sshll.u32 %s4927_s15, 4  ;;  %s4842_s21 = int_to_ptr.vmem [resolvable:$false] %s4841_s21 }
  0x43   : > { %v295_v18 = vsub.f32 %v5087_v12, %v5090_v15  ;;  %v307_v19 = vand.u32 4294901760, %v306_v16  ;;  %v1234_v34 = vsub.f32 %v1232_v30, %v1233_v32  ;;  %v4563_v42 = vpack.c.bf16 %v1233_v32, %v1226_v31  ;;  %p4839_p11 = pnand %p4838_p8, %p5377_p9  ;;  %s4843_s24 = scalar_lea.vmem %s4842_s21, 1024 }
  0x44   : > { %v314_v20 = vand.u32 4294901760, %v313_v17  ;;  %v1228_v36 = vand.u32 4294901760, %v1227_v33  ;;  %v2147_v47 = vand.u32 4294901760, %v2146_v45  ;;  %v2154_v48 = vand.u32 4294901760, %v2153_v46  ;;  %p4844_p6 = scmp.lt.s32.totalorder %s5311_s29, %s4842_s21  ;;  %p4845_p13 = scmp.lt.s32.totalorder %s4843_s24, %s4837_s19 }
  0x45   : > { %v5095_v21 = vand.u32 4294901760, %v295_v18  ;;  %v1235_v37 = vand.u32 4294901760, %v1234_v34  ;;  %v4587_v51 = vpack.c.bf16 %v2071_v44, %v2068_v43  ;;  %v4593_v55 = vpack.c.bf16 %v2153_v46, %v2146_v45  ;;  %p4840_p0 = pneg %p4839_p11 }
  0x46   : > { %v4518_v22 = vpack.c.bf16 %v314_v20, %v307_v19  ;;  %v2148_v49 = vsub.f32 %v2146_v45, %v2147_v47  ;;  %v2155_v50 = vsub.f32 %v2153_v46, %v2154_v48  ;;  %v4599_v58 = vpack.c.bf16 %v2154_v48, %v2147_v47  ;;  %p4846_p2 = por %p4845_p13, %p4844_p6 }
  0x47   : > { %4183 = vmatmul.mubr.f32.vlgmr.msra.gmra.mrb[0].mxu0 %v5095_v21  ;;  %v4554_v38 = vpack.c.bf16 %v1235_v37, %v1228_v36  ;;  %v2989_v59 = vand.u32 4294901760, %v219_v56  ;;  %v2992_v60 = vand.u32 4294901760, %v220_v57  ;;  %v691_v13 = vand.u32 4294901760, %v212_v10 }
  0x48   : > { %4519 = vmatpush3.bf16.msra.mxu0 %v4518_v22  ;;  %4189 = vmatprep.mubr.msk.f32.mxu0 %vm4925_vm0, %v4926_v1  ;;  %v2149_v52 = vand.u32 4294901760, %v2148_v49  ;;  %v2156_v53 = vand.u32 4294901760, %v2155_v50  ;;  %p4847_p5 = pnand %p4846_p2, %p4840_p0 }
  0x49   : > { %4520 = vmatprep.subr.bf16.mxu0 %v4924_v0  ;;  %v3067_v61 = vsub.f32 %v219_v56, %v2989_v59  ;;  %v3074_v62 = vsub.f32 %v220_v57, %v2992_v60  ;;  %v4623_v5 = vpack.c.bf16 %v2992_v60, %v2989_v59  ;;  %v773_v18 = vsub.f32 %v212_v10, %v691_v13 }
  0x4a   : > { %v4590_v54 = vpack.c.bf16 %v2156_v53, %v2149_v52 }
  0x4b   : > { %v3068_v63 = vand.u32 4294901760, %v3067_v61  ;;  %v3075_v2 = vand.u32 4294901760, %v3074_v62  ;;  %v774_v20 = vand.u32 4294901760, %v773_v18 }
  0x4d   : > { %v3069_v3 = vsub.f32 %v3067_v61, %v3068_v63  ;;  %v3076_v4 = vsub.f32 %v3074_v62, %v3075_v2  ;;  %v4635_v28 = vpack.c.bf16 %v3075_v2, %v3068_v63 }
  0x4f   : > { %4190 = vmatmul.mubr.f32.vlgmr.msra.gmra.mrb[0].mxu0 %v5084_v8  ;;  %v3070_v6 = vand.u32 4294901760, %v3069_v3  ;;  %v3077_v7 = vand.u32 4294901760, %v3076_v4 }
  0x50   : > { %4522 = vmatpush3.bf16.msra.mxu0 %v4521_v23  ;;  %4196 = vmatprep.mubr.msk.f32.mxu0 %vm4925_vm0, %v4926_v1  ;;  %v775_v23 = vsub.f32 %v773_v18, %v774_v20 }
  0x51   : > { %4523 = vmatprep.subr.bf16.mxu0 %v4924_v0  ;;  %v4626_v14 = vpack.c.bf16 %v3077_v7, %v3070_v6 }
  0x52   : > { %v776_v25 = vand.u32 4294901760, %v775_v23 }
  0x57   : > { %4197 = vmatmul.mubr.f32.vlgmr.msra.gmra.mrb[0].mxu0 %v5087_v12 }
  0x58   : > { %4525 = vmatpush3.bf16.msra.mxu0 %v4515_v9  ;;  %4203 = vmatprep.mubr.msk.f32.mxu0 %vm4925_vm0, %v4926_v1 }
  0x59   : > { %4526 = vmatprep.subr.bf16.mxu0 %v4924_v0 }
  0x5f   : > { %4204 = vmatmul.mubr.f32.vlgmr.msra.gmra.mrb[0].mxu0 %v5090_v15 }
  0x60   : > { %4528 = vmatpush3.bf16.msra.mxu0 %v4527_v26  ;;  %4210 = vmatprep.mubr.msk.f32.mxu0 %vm4925_vm0, %v4926_v1  ;;  %v4629_v26 = vpack.c.bf16 %v3074_v62, %v3067_v61 }
  0x61   : > { %4529 = vmatprep.subr.bf16.mxu0 %v4924_v0 }
  0x67   : > { %4211 = vmatmul.mubr.f32.vlgmr.msra.gmra.mrb[0].mxu0 %v5084_v8 }
  0x68   : > { %4531 = vmatpush3.bf16.msra.mxu0 %v4515_v9  ;;  %4217 = vmatprep.mubr.msk.f32.mxu0 %vm4925_vm0, %v4926_v1  ;;  %v211_v9 = vld [vmem:[%s5368_s2] sm:$0xff] }
  0x69   : > { %4550 = vmatprep.subr.bf16.mxu0 %v4924_v0  ;;  %v688_v11 = vand.u32 4294901760, %v211_v9 }
  0x6b   : > { %v5181_v16 = vpack.c.bf16 %v691_v13, %v688_v11  ;;  %v766_v17 = vsub.f32 %v211_v9, %v688_v11 }
  0x6d   : > { %4534 = vmatpush3.bf16.msra.mxu1 %v5181_v16  ;;  %v767_v19 = vand.u32 4294901760, %v766_v17 }
  0x6e   : > { %4535 = vmatprep.subr.bf16.mxu1 %v4924_v0 }
  0x6f   : > { %4218 = vmatmul.mubr.f32.vlgmr.msra.gmra.mrb[0].mxu0 %v5084_v8  ;;  %v768_v22 = vsub.f32 %v766_v17, %v767_v19  ;;  %v5205_v29 = vpack.c.bf16 %v774_v20, %v767_v19 }
  0x70   : > { %4552 = vmatpush3.bf16.msra.mxu0 %v4551_v35  ;;  %4266 = vmatprep.mubr.msk.f32.mxu0 %vm4925_vm0, %v4926_v1 }
  0x71   : > { %4553 = vmatprep.subr.bf16.mxu0 %v4924_v0  ;;  %v769_v24 = vand.u32 4294901760, %v768_v22 }
  0x73   : > { %4267 = vmatmul.mubr.f32.vlgmr.msra.gmra.mrb[2].mxu0 %v5095_v21  ;;  %v5189_v27 = vpack.c.bf16 %v776_v25, %v769_v24 }
  0x74   : > { %4555 = vmatpush3.bf16.msra.mxu0 %v4554_v38  ;;  %4273 = vmatprep.mubr.msk.f32.mxu0 %vm4925_vm0, %v4926_v1 }
  0x75   : > { %4556 = vmatprep.subr.bf16.mxu0 %v4924_v0 }
  0x7b   : > { %4274 = vmatmul.mubr.f32.vlgmr.msra.gmra.mrb[2].mxu0 %v5084_v8 }
  0x7c   : > { %4558 = vmatpush3.bf16.msra.mxu0 %v4557_v39  ;;  %4280 = vmatprep.mubr.msk.f32.mxu0 %vm4925_vm0, %v4926_v1 }
  0x7d   : > { %4559 = vmatprep.subr.bf16.mxu0 %v4924_v0 }
  0x83   : > { %4281 = vmatmul.mubr.f32.vlgmr.msra.gmra.mrb[2].mxu0 %v5087_v12 }
  0x84   : > { %4561 = vmatpush3.bf16.msra.mxu0 %v4551_v35  ;;  %4287 = vmatprep.mubr.msk.f32.mxu0 %vm4925_vm0, %v4926_v1 }
  0x85   : > { %4562 = vmatprep.subr.bf16.mxu0 %v4924_v0 }
  0x8b   : > { %4288 = vmatmul.mubr.f32.vlgmr.msra.gmra.mrb[2].mxu0 %v5090_v15 }
  0x8c   : > { %4564 = vmatpush3.bf16.msra.mxu0 %v4563_v42  ;;  %4294 = vmatprep.mubr.msk.f32.mxu0 %vm4925_vm0, %v4926_v1 }
  0x8d   : > { %4565 = vmatprep.subr.bf16.mxu0 %v4924_v0 }
  0x93   : > { %4295 = vmatmul.mubr.f32.vlgmr.msra.gmra.mrb[2].mxu0 %v5084_v8 }
  0x94   : > { %4567 = vmatpush3.bf16.msra.mxu0 %v4551_v35  ;;  %4301 = vmatprep.mubr.msk.f32.mxu0 %vm4925_vm0, %v4926_v1 }
  0x95   : > { %4586 = vmatprep.subr.bf16.mxu0 %v4924_v0 }
  0x9b   : > { %4302 = vmatmul.mubr.f32.vlgmr.msra.gmra.mrb[2].mxu0 %v5084_v8 }
  0x9c   : > { %4588 = vmatpush3.bf16.msra.mxu0 %v4587_v51  ;;  %4350 = vmatprep.mubr.msk.f32.mxu0 %vm4925_vm0, %v4926_v1 }
  0x9d   : > { %4589 = vmatprep.subr.bf16.mxu0 %v4924_v0 }
  0x9f   : > { %4351 = vmatmul.mubr.f32.vlgmr.msra.gmra.mrb[4].mxu0 %v5095_v21 }
  0xa0   : > { %4591 = vmatpush3.bf16.msra.mxu0 %v4590_v54  ;;  %4357 = vmatprep.mubr.msk.f32.mxu0 %vm4925_vm0, %v4926_v1 }
  0xa1   : > { %4592 = vmatprep.subr.bf16.mxu0 %v4924_v0 }
  0xa7   : > { %4358 = vmatmul.mubr.f32.vlgmr.msra.gmra.mrb[4].mxu0 %v5084_v8 }
  0xa8   : > { %4594 = vmatpush3.bf16.msra.mxu0 %v4593_v55  ;;  %4364 = vmatprep.mubr.msk.f32.mxu0 %vm4925_vm0, %v4926_v1 }
  0xa9   : > { %4595 = vmatprep.subr.bf16.mxu0 %v4924_v0 }
  0xaf   : > { %4365 = vmatmul.mubr.f32.vlgmr.msra.gmra.mrb[4].mxu0 %v5087_v12 }
  0xb0   : > { %4597 = vmatpush3.bf16.msra.mxu0 %v4587_v51  ;;  %4371 = vmatprep.mubr.msk.f32.mxu0 %vm4925_vm0, %v4926_v1 }
  0xb1   : > { %4598 = vmatprep.subr.bf16.mxu0 %v4924_v0 }
  0xb7   : > { %4372 = vmatmul.mubr.f32.vlgmr.msra.gmra.mrb[4].mxu0 %v5090_v15 }
  0xb8   : > { %4600 = vmatpush3.bf16.msra.mxu0 %v4599_v58  ;;  %4378 = vmatprep.mubr.msk.f32.mxu0 %vm4925_vm0, %v4926_v1 }
  0xb9   : > { %4601 = vmatprep.subr.bf16.mxu0 %v4924_v0 }
  0xbf   : > { %4379 = vmatmul.mubr.f32.vlgmr.msra.gmra.mrb[4].mxu0 %v5084_v8 }
  0xc0   : > { %4603 = vmatpush3.bf16.msra.mxu0 %v4587_v51  ;;  %4385 = vmatprep.mubr.msk.f32.mxu0 %vm4925_vm0, %v4926_v1 }
  0xc1   : > { %4622 = vmatprep.subr.bf16.mxu0 %v4924_v0 }
  0xc7   : > { %4386 = vmatmul.mubr.f32.vlgmr.msra.gmra.mrb[4].mxu0 %v5084_v8 }
  0xc8   : > { %4624 = vmatpush3.bf16.msra.mxu0 %v4623_v5  ;;  %4434 = vmatprep.mubr.msk.f32.mxu0 %vm4925_vm0, %v4926_v1 }
  0xc9   : > { %4625 = vmatprep.subr.bf16.mxu0 %v4924_v0 }
  0xcb   : > { %4435 = vmatmul.mubr.f32.vlgmr.msra.gmra.mrb[6].mxu0 %v5095_v21  ;;  %v5195_v21 = vpack.c.bf16 %v773_v18, %v766_v17 }
  0xcc   : > { %4627 = vmatpush3.bf16.msra.mxu0 %v4626_v14  ;;  %4441 = vmatprep.mubr.msk.f32.mxu0 %vm4925_vm0, %v4926_v1 }
  0xcd   : > { %4628 = vmatprep.subr.bf16.mxu0 %v4924_v0 }
  0xd3   : > { %4442 = vmatmul.mubr.f32.vlgmr.msra.gmra.mrb[6].mxu0 %v5084_v8 }
  0xd4   : > { %4630 = vmatpush3.bf16.msra.mxu0 %v4629_v26  ;;  %4448 = vmatprep.mubr.msk.f32.mxu0 %vm4925_vm0, %v4926_v1 }
  0xd5   : > { %4631 = vmatprep.subr.bf16.mxu0 %v4924_v0 }
  0xdb   : > { %4449 = vmatmul.mubr.f32.vlgmr.msra.gmra.mrb[6].mxu0 %v5087_v12 }
  0xdc   : > { %4633 = vmatpush3.bf16.msra.mxu0 %v4623_v5  ;;  %4455 = vmatprep.mubr.msk.f32.mxu0 %vm4925_vm0, %v4926_v1 }
  0xdd   : > { %4634 = vmatprep.subr.bf16.mxu0 %v4924_v0 }
  0xe3   : > { %4456 = vmatmul.mubr.f32.vlgmr.msra.gmra.mrb[6].mxu0 %v5090_v15 }
  0xe4   : > { %4636 = vmatpush3.bf16.msra.mxu0 %v4635_v28  ;;  %4462 = vmatprep.mubr.msk.f32.mxu0 %vm4925_vm0, %v4926_v1 }
  0xe5   : > { %4637 = vmatprep.subr.bf16.mxu0 %v4924_v0 }
  0xeb   : > { %4463 = vmatmul.mubr.f32.vlgmr.msra.gmra.mrb[6].mxu0 %v5084_v8 }
  0xec   : > { %4639 = vmatpush3.bf16.msra.mxu0 %v4623_v5  ;;  %4469 = vmatprep.mubr.msk.f32.mxu0 %vm4925_vm0, %v4926_v1 }
  0xf3   : > { %4470 = vmatmul.mubr.f32.vlgmr.msra.gmra.mrb[6].mxu0 %v5084_v8 }
 0x142   : > { %v680_v12 = vpop.f32.mrb[0].mxu0 }
 0x143   : > { %v685_v30 = vsel %vm221_vm1, %v680_v12, 0  ;;  %v4219_v15 = vpop.f32.mrb[1].mxu0 }
 0x144   : > { %v754_v31 = vand.u32 4294901760, %v685_v30 }
 0x146   : > { %v755_v32 = vsub.f32 %v685_v30, %v754_v31 }
 0x148   : > { %v756_v33 = vand.u32 4294901760, %v755_v32 }
 0x14a   : > { %v757_v34 = vsub.f32 %v755_v32, %v756_v33 }
 0x14c   : > { %v758_v35 = vand.u32 4294901760, %v757_v34 }
 0x14e   : > { %4225 = vmatmul.mubr.f32.vlgmr.msra.gmra.mrb[0].mxu1 %v758_v35 }
 0x14f   : > { %4537 = vmatpush3.bf16.msra.mxu1 %v5189_v27  ;;  %4231 = vmatprep.mubr.msk.f32.mxu1 %vm4925_vm0, %v4926_v1 }
 0x150   : > { %4538 = vmatprep.subr.bf16.mxu1 %v4924_v0 }
 0x156   : > { %4232 = vmatmul.mubr.f32.vlgmr.msra.gmra.mrb[0].mxu1 %v754_v31 }
 0x157   : > { %4540 = vmatpush3.bf16.msra.mxu1 %v5195_v21  ;;  %4238 = vmatprep.mubr.msk.f32.mxu1 %vm4925_vm0, %v4926_v1 }
 0x158   : > { %4541 = vmatprep.subr.bf16.mxu1 %v4924_v0 }
 0x15e   : > { %4239 = vmatmul.mubr.f32.vlgmr.msra.gmra.mrb[0].mxu1 %v755_v32 }
 0x15f   : > { %4543 = vmatpush3.bf16.msra.mxu1 %v5181_v16  ;;  %4245 = vmatprep.mubr.msk.f32.mxu1 %vm4925_vm0, %v4926_v1 }
 0x160   : > { %4544 = vmatprep.subr.bf16.mxu1 %v4924_v0 }
 0x166   : > { %4246 = vmatmul.mubr.f32.vlgmr.msra.gmra.mrb[0].mxu1 %v756_v33 }
 0x167   : > { %4546 = vmatpush3.bf16.msra.mxu1 %v5205_v29  ;;  %4252 = vmatprep.mubr.msk.f32.mxu1 %vm4925_vm0, %v4926_v1 }
 0x168   : > { %4547 = vmatprep.subr.bf16.mxu1 %v4924_v0 }
 0x16e   : > { %4253 = vmatmul.mubr.f32.vlgmr.msra.gmra.mrb[0].mxu1 %v754_v31  ;;  %v1601_v8 = vpop.f32.mrb[2].mxu0 }
 0x16f   : > { %v1606_v36 = vsel %vm221_vm1, %v1601_v8, 0  ;;  %4549 = vmatpush3.bf16.msra.mxu1 %v5181_v16  ;;  %v4303_v37 = vpop.f32.mrb[3].mxu0  ;;  %4259 = vmatprep.mubr.msk.f32.mxu1 %vm4925_vm0, %v4926_v1 }
 0x170   : > { %v1675_v38 = vand.u32 4294901760, %v1606_v36  ;;  %4568 = vmatprep.subr.bf16.mxu1 %v4924_v0 }
 0x172   : > { %v1676_v39 = vsub.f32 %v1606_v36, %v1675_v38 }
 0x174   : > { %v1677_v40 = vand.u32 4294901760, %v1676_v39 }
 0x176   : > { %v1678_v41 = vsub.f32 %v1676_v39, %v1677_v40  ;;  %4260 = vmatmul.mubr.f32.vlgmr.msra.gmra.mrb[0].mxu1 %v754_v31 }
 0x177   : > { %4570 = vmatpush3.bf16.msra.mxu1 %v5181_v16  ;;  %4308 = vmatprep.mubr.msk.f32.mxu1 %vm4925_vm0, %v4926_v1 }
 0x178   : > { %v1679_v42 = vand.u32 4294901760, %v1678_v41  ;;  %4571 = vmatprep.subr.bf16.mxu1 %v4924_v0 }
 0x17a   : > { %4309 = vmatmul.mubr.f32.vlgmr.msra.gmra.mrb[2].mxu1 %v1679_v42 }
 0x17b   : > { %4573 = vmatpush3.bf16.msra.mxu1 %v5189_v27  ;;  %4315 = vmatprep.mubr.msk.f32.mxu1 %vm4925_vm0, %v4926_v1 }
 0x17c   : > { %4574 = vmatprep.subr.bf16.mxu1 %v4924_v0 }
 0x182   : > { %4316 = vmatmul.mubr.f32.vlgmr.msra.gmra.mrb[2].mxu1 %v1675_v38 }
 0x183   : > { %4576 = vmatpush3.bf16.msra.mxu1 %v5195_v21  ;;  %4322 = vmatprep.mubr.msk.f32.mxu1 %vm4925_vm0, %v4926_v1 }
 0x184   : > { %4577 = vmatprep.subr.bf16.mxu1 %v4924_v0 }
 0x18a   : > { %4323 = vmatmul.mubr.f32.vlgmr.msra.gmra.mrb[2].mxu1 %v1676_v39 }
 0x18b   : > { %4579 = vmatpush3.bf16.msra.mxu1 %v5181_v16  ;;  %4329 = vmatprep.mubr.msk.f32.mxu1 %vm4925_vm0, %v4926_v1 }
 0x18c   : > { %4580 = vmatprep.subr.bf16.mxu1 %v4924_v0 }
 0x192   : > { %4330 = vmatmul.mubr.f32.vlgmr.msra.gmra.mrb[2].mxu1 %v1677_v40 }
 0x193   : > { %4582 = vmatpush3.bf16.msra.mxu1 %v5205_v29  ;;  %4336 = vmatprep.mubr.msk.f32.mxu1 %vm4925_vm0, %v4926_v1 }
 0x194   : > { %4583 = vmatprep.subr.bf16.mxu1 %v4924_v0 }
 0x19a   : > { %4337 = vmatmul.mubr.f32.vlgmr.msra.gmra.mrb[2].mxu1 %v1675_v38  ;;  %v2522_v43 = vpop.f32.mrb[4].mxu0 }
 0x19b   : > { %v2527_v44 = vsel %vm221_vm1, %v2522_v43, 0  ;;  %4585 = vmatpush3.bf16.msra.mxu1 %v5181_v16  ;;  %v4387_v45 = vpop.f32.mrb[5].mxu0  ;;  %4343 = vmatprep.mubr.msk.f32.mxu1 %vm4925_vm0, %v4926_v1 }
 0x19c   : > { %v2596_v46 = vand.u32 4294901760, %v2527_v44  ;;  %4604 = vmatprep.subr.bf16.mxu1 %v4924_v0 }
 0x19e   : > { %v2597_v47 = vsub.f32 %v2527_v44, %v2596_v46 }
 0x1a0   : > { %v2598_v48 = vand.u32 4294901760, %v2597_v47 }
 0x1a2   : > { %v2599_v49 = vsub.f32 %v2597_v47, %v2598_v48  ;;  %4344 = vmatmul.mubr.f32.vlgmr.msra.gmra.mrb[2].mxu1 %v1675_v38 }
 0x1a3   : > { %4606 = vmatpush3.bf16.msra.mxu1 %v5181_v16  ;;  %4392 = vmatprep.mubr.msk.f32.mxu1 %vm4925_vm0, %v4926_v1 }
 0x1a4   : > { %v2600_v50 = vand.u32 4294901760, %v2599_v49  ;;  %4607 = vmatprep.subr.bf16.mxu1 %v4924_v0 }
 0x1a6   : > { %4393 = vmatmul.mubr.f32.vlgmr.msra.gmra.mrb[4].mxu1 %v2600_v50 }
 0x1a7   : > { %4609 = vmatpush3.bf16.msra.mxu1 %v5189_v27  ;;  %4399 = vmatprep.mubr.msk.f32.mxu1 %vm4925_vm0, %v4926_v1 }
 0x1a8   : > { %4610 = vmatprep.subr.bf16.mxu1 %v4924_v0 }
 0x1ae   : > { %4400 = vmatmul.mubr.f32.vlgmr.msra.gmra.mrb[4].mxu1 %v2596_v46 }
 0x1af   : > { %4612 = vmatpush3.bf16.msra.mxu1 %v5195_v21  ;;  %4406 = vmatprep.mubr.msk.f32.mxu1 %vm4925_vm0, %v4926_v1 }
 0x1b0   : > { %4613 = vmatprep.subr.bf16.mxu1 %v4924_v0 }
 0x1b6   : > { %4407 = vmatmul.mubr.f32.vlgmr.msra.gmra.mrb[4].mxu1 %v2597_v47 }
 0x1b7   : > { %4615 = vmatpush3.bf16.msra.mxu1 %v5181_v16  ;;  %4413 = vmatprep.mubr.msk.f32.mxu1 %vm4925_vm0, %v4926_v1 }
 0x1b8   : > { %4616 = vmatprep.subr.bf16.mxu1 %v4924_v0 }
 0x1be   : > { %4414 = vmatmul.mubr.f32.vlgmr.msra.gmra.mrb[4].mxu1 %v2598_v48 }
 0x1bf   : > { %4618 = vmatpush3.bf16.msra.mxu1 %v5205_v29  ;;  %4420 = vmatprep.mubr.msk.f32.mxu1 %vm4925_vm0, %v4926_v1 }
 0x1c0   : > { %4619 = vmatprep.subr.bf16.mxu1 %v4924_v0 }
 0x1c6   : > { %4421 = vmatmul.mubr.f32.vlgmr.msra.gmra.mrb[4].mxu1 %v2596_v46  ;;  %v3443_v51 = vpop.f32.mrb[6].mxu0 }
 0x1c7   : > { %v3448_v52 = vsel %vm221_vm1, %v3443_v51, 0  ;;  %4621 = vmatpush3.bf16.msra.mxu1 %v5181_v16  ;;  %v4471_v53 = vpop.f32.mrb[7].mxu0  ;;  %4427 = vmatprep.mubr.msk.f32.mxu1 %vm4925_vm0, %v4926_v1 }
 0x1c8   : > { %v3517_v54 = vand.u32 4294901760, %v3448_v52  ;;  %4640 = vmatprep.subr.bf16.mxu1 %v4924_v0 }
 0x1ca   : > { %v3518_v55 = vsub.f32 %v3448_v52, %v3517_v54 }
 0x1cc   : > { %v3519_v56 = vand.u32 4294901760, %v3518_v55 }
 0x1ce   : > { %v3520_v57 = vsub.f32 %v3518_v55, %v3519_v56  ;;  %4428 = vmatmul.mubr.f32.vlgmr.msra.gmra.mrb[4].mxu1 %v2596_v46 }
 0x1cf   : > { %4642 = vmatpush3.bf16.msra.mxu1 %v5181_v16  ;;  %4476 = vmatprep.mubr.msk.f32.mxu1 %vm4925_vm0, %v4926_v1 }
 0x1d0   : > { %v3521_v58 = vand.u32 4294901760, %v3520_v57  ;;  %4643 = vmatprep.subr.bf16.mxu1 %v4924_v0 }
 0x1d2   : > { %4477 = vmatmul.mubr.f32.vlgmr.msra.gmra.mrb[6].mxu1 %v3521_v58 }
 0x1d3   : > { %4645 = vmatpush3.bf16.msra.mxu1 %v5189_v27  ;;  %4483 = vmatprep.mubr.msk.f32.mxu1 %vm4925_vm0, %v4926_v1 }
 0x1d4   : > { %4646 = vmatprep.subr.bf16.mxu1 %v4924_v0 }
 0x1da   : > { %4484 = vmatmul.mubr.f32.vlgmr.msra.gmra.mrb[6].mxu1 %v3517_v54 }
 0x1db   : > { %4648 = vmatpush3.bf16.msra.mxu1 %v5195_v21  ;;  %4490 = vmatprep.mubr.msk.f32.mxu1 %vm4925_vm0, %v4926_v1 }
 0x1dc   : > { %4649 = vmatprep.subr.bf16.mxu1 %v4924_v0 }
 0x1e2   : > { %4491 = vmatmul.mubr.f32.vlgmr.msra.gmra.mrb[6].mxu1 %v3518_v55 }
 0x1e3   : > { %4651 = vmatpush3.bf16.msra.mxu1 %v5181_v16  ;;  %4497 = vmatprep.mubr.msk.f32.mxu1 %vm4925_vm0, %v4926_v1 }
 0x1e4   : > { %4652 = vmatprep.subr.bf16.mxu1 %v4924_v0 }
 0x1ea   : > { %4498 = vmatmul.mubr.f32.vlgmr.msra.gmra.mrb[6].mxu1 %v3519_v56 }
 0x1eb   : > { %4654 = vmatpush3.bf16.msra.mxu1 %v5205_v29  ;;  %4504 = vmatprep.mubr.msk.f32.mxu1 %vm4925_vm0, %v4926_v1 }
 0x1ec   : > { %4655 = vmatprep.subr.bf16.mxu1 %v4924_v0 }
 0x1f2   : > { %4505 = vmatmul.mubr.f32.vlgmr.msra.gmra.mrb[6].mxu1 %v3517_v54 }
 0x1f3   : > { %4657 = vmatpush3.bf16.msra.mxu1 %v5181_v16  ;;  %4511 = vmatprep.mubr.msk.f32.mxu1 %vm4925_vm0, %v4926_v1 }
 0x1fa   : > { %4512 = vmatmul.mubr.f32.vlgmr.msra.gmra.mrb[6].mxu1 %v3517_v54 }
 0x249   : > { %v1142_v59 = vpop.f32.mrb[0].mxu1 }
 0x24a   : > { %3910 = vst.msk [vmem:[%s207_s28] sm:$0xff] %vm3909_vm2, %v1142_v59  ;;  %v4261_v60 = vpop.f32.mrb[1].mxu1 }
 0x275   : > { %v2063_v61 = vpop.f32.mrb[2].mxu1 }
 0x276   : > { %3911 = vst.msk [vmem:[%s207_s28 + $0x8] sm:$0xff] %vm3909_vm2, %v2063_v61  ;;  %v4345_v0 = vpop.f32.mrb[3].mxu1 }
 0x2a1   : > { %v2984_v62 = vpop.f32.mrb[4].mxu1 }
 0x2a2   : > { %3912 = vst.msk [vmem:[%s207_s28 + $0x10] sm:$0xff] %vm3909_vm2, %v2984_v62  ;;  %v4429_v63 = vpop.f32.mrb[5].mxu1 }
 0x2cd   : > { %v3905_v1 = vpop.f32.mrb[6].mxu1 }
 0x2ce   : > { %3913 = vst.msk [vmem:[%s207_s28 + $0x18] sm:$0xff] %vm3909_vm2, %v3905_v1  ;;  %v4513_v2 = vpop.f32.mrb[7].mxu1 }
 0x2cf   : > { %4850 = shalt.err (!%p4847_p5)
}
 0x2d0   : > { %s4851_s6 = scalar_lea.hbm %s5316_s7, 512  ;;  %s4855_s10 = scalar_lea.hbm %s5369_s3, 1024 }
 0x2d1   : > { %p4852_p4 = scmp.ne.s32.totalorder %s5316_s7, %s4851_s6  ;;  %p4856_p12 = scmp.lt.u32.totalorder %s5316_s7, %s5369_s3 }
 0x2d2   : > { %p4857_p1 = scmp.lt.u32.totalorder %s4855_s10, %s4851_s6  ;;  %p4859_p8 = scmp.lt.u32.totalorder %s4851_s6, %s5316_s7 }
 0x2d3   : > { %p4853_p7 = pnand %p4852_p4, %p5377_p9 }
 0x2d4   : > { %p4858_p3 = por %p4857_p1, %p4856_p12 }
 0x2d5   : > { %p4854_p10 = pneg %p4853_p7 }
 0x2d6   : > { %p4860_p11 = por %p4859_p8, %p4858_p3 }
 0x2d8   : > { %p4861_p0 = pnand %p4860_p11, %p4854_p10 }
 0x2da   : > { %4864 = shalt.err (!%p4861_p0)
}
 0x2db   : > { %s4928_s28 = smov 128   ;;  %s4929_s30 = smov 8  }
 0x2dc   : > { %4740 = dma.vmem_to_hbm [thread:$0]  (%p5377_p9), %s5311_s29, 512, %s5316_s7, %s3915_s18, %s4928_s28, %s4928_s28, %s4929_s30  }
 0x2dd PF: > { %s3945_s4 = sand.u32 1, %s4899_s12   ;;  %p5378_p6 = scmp.ne.s32.totalorder %s5374_s27, 0 }
 0x2de   : > { %p5379_p13 = scmp.ge.s32.totalorder %s4919_s17, 2  ;;  %s3946_s5 = scalar_lea.sflag [#allocation4], %s3945_s4 }
 0x2e0   : > { %p4747_p2 = pnand %p5379_p13, %p5378_p6 }
 0x2e2   : > { %4894 = dma.done.wait (!%p4747_p2), %s3946_s5, 512  }
 0x2e3   : > { %4896 = vsyncadd (!%p4747_p2), %s3946_s5, 4294966784  ;;  %s19_s17 = sadd.s32 1, %s4919_s17   ;;  %s5380_s12 = smov %s4903_s13 }
 0x2e4   : > { %p16_p5 = scmp.ge.s32.totalorder %s19_s17, 4   ;;  %s5381_s13 = smov %s4907_s14 }
 0x2e5   : > { %s5382_s14 = smov %s5006_s26  ;;  %s5383_s15 = smov %s4915_s16 }
 0x2e6   : > { %s5384_s16 = smov %s5386_s20  ;;  %18 = sbr.rel (!%p16_p5) target bundleno = 6 (0x6), region = 77 }
 0x2ed   :  { %3951 = vsyncpa [#allocation3], 1 }
 0x2ee   :  { %3953 = vsyncpa [#allocation3 + $0x1], 1 }
 0x2ef   :  { %3954 = vsyncpa [#allocation4], 1 }
 0x2f0   :  { %3956 = vsyncpa [#allocation4 + $0x1], 1 }

</bundles_post_ra>
